<compile_context>
chip_gen: v5e
topology: v5e:2x2
jax: 0.10.0
libtpu: 0.0.40
codegen_flags: <defaults>
</compile_context>

<pallas_src>
import functools

import jax
import jax.numpy as jnp
from jax.experimental import pallas as pl
from jax.experimental.pallas import tpu as pltpu

_LANE = 128
_SUBLANE = 8
# Live-VMEM budget used for tile sizing (kept well under the 32 MiB scoped
# limit so double-buffering survives on v7x's 64 MiB physical VMEM).
_VMEM_BUDGET = 24 * 1024 * 1024


def _cdiv(a, b):
    return -(-a // b)


def _spatial_reg_loss_kernel(*refs, norm, min_visibility, ignore_index,
                             num_channels, h_total, tile_h, tiles_per_chunk,
                             has_tail, fold):
    use_vis = min_visibility > 0
    need_mask = use_vis or (ignore_index is not None)

    it = iter(refs)
    pred_ref = next(it)
    tgt_ref = next(it)
    vis_ref = next(it) if use_vis else None
    loss_out_ref = next(it)
    mask_out_ref = next(it) if need_mask else None

    c_idx = pl.program_id(1)
    t_idx = pl.program_id(2)

    p = pred_ref[0].astype(jnp.float32)            # (C, TH, W)
    tg = tgt_ref[0].astype(jnp.float32)            # (C, TH, W)
    diff = p - tg
    loss = jnp.abs(diff) if norm == 1 else diff * diff

    th, w = loss.shape[-2], loss.shape[-1]

    # --- build mask (broadcastable to (C, TH, W)) ---------------------------
    mask = None
    if use_vis:
        mask = vis_ref[...] >= min_visibility      # (1, TH, W)
    if ignore_index is not None:
        ign = tg != jnp.float32(ignore_index)      # (C, TH, W)
        mask = ign if mask is None else jnp.logical_and(mask, ign)
    if has_tail:
        # Tail tile may run past H: OOB rows hold undefined data -> mask them.
        h0 = (c_idx * tiles_per_chunk + t_idx) * tile_h
        rows = h0 + jax.lax.broadcasted_iota(jnp.int32, (th, w), 0)
        valid = rows < h_total                     # (TH, W)
        mask = valid if mask is None else jnp.logical_and(mask, valid)

    if mask is not None:
        loss = jnp.where(mask, loss, 0.0)

    def _fold(x):                                  # (TH, W) -> (ACC_R, W)
        if fold:
            # Free relayout (groups of 8 sublanes == one vreg row), VPU adds.
            return x.reshape(th // _SUBLANE, _SUBLANE, w).sum(axis=0)
        return x

    loss_part = _fold(jnp.sum(loss, axis=0))       # (ACC_R, W)

    mask_part = None
    if need_mask:
        mf = mask.astype(jnp.float32)              # (1 or C, TH, W)
        if mf.shape[0] == 1 and num_channels > 1:
            mask_c = mf[0] * jnp.float32(num_channels)   # broadcast over C
        else:
            mask_c = jnp.sum(mf, axis=0)
        mask_part = _fold(mask_c)                  # (ACC_R, W)

    acc_r = loss_part.shape[0]
    loss_part = loss_part.reshape(1, 1, acc_r, w)
    if need_mask:
        mask_part = mask_part.reshape(1, 1, acc_r, w)

    @pl.when(t_idx == 0)
    def _():
        loss_out_ref[...] = loss_part
        if need_mask:
            mask_out_ref[...] = mask_part

    @pl.when(t_idx != 0)
    def _():
        loss_out_ref[...] += loss_part
        if need_mask:
            mask_out_ref[...] += mask_part


def spatial_regression_loss(pred, target, visibility, *, norm, min_visibility,
                            ignore_index, eps=1e-6, tile_h_cap=None):
    if norm not in (1, 2):
        raise ValueError(f"Expected norm 1 or 2, but got norm={norm}")

    B, C, H, W = pred.shape
    use_vis = min_visibility > 0
    need_mask = use_vis or (ignore_index is not None)

    w_lanes = _cdiv(W, _LANE) * _LANE
    pt_item = max(jnp.dtype(pred.dtype).itemsize,
                  jnp.dtype(target.dtype).itemsize)
    vis_item = jnp.dtype(visibility.dtype).itemsize if use_vis else 0

    def live_bytes(th):
        th_pad = _cdiv(th, _SUBLANE) * _SUBLANE
        b = 2 * 2 * C * th_pad * w_lanes * pt_item       # pred+target, 2 bufs
        if use_vis:
            b += 2 * th_pad * w_lanes * vis_item         # visibility, 2 bufs
        return b

    # --- tile_h: largest block fitting the VMEM budget ----------------------
    if live_bytes(H) <= _VMEM_BUDGET:
        tile_h = H
    else:
        per_row = live_bytes(_SUBLANE) / _SUBLANE
        tile_h = max(_SUBLANE,
                     (min(H, int(_VMEM_BUDGET // per_row)) // _SUBLANE)
                     * _SUBLANE)
    if tile_h_cap is not None and tile_h > tile_h_cap:
        tile_h = max(_SUBLANE, (tile_h_cap // _SUBLANE) * _SUBLANE)
        if tile_h > H:
            tile_h = H

    num_h_tiles = _cdiv(H, tile_h)

    # Try to make the tile count even so the chunk axis can feed both v7x
    # TensorCores even when B == 1.
    if num_h_tiles > 1 and num_h_tiles % 2 == 1:
        alt = _cdiv(_cdiv(H, num_h_tiles + 1), _SUBLANE) * _SUBLANE
        if (alt >= _SUBLANE and _cdiv(H, alt) % 2 == 0
                and live_bytes(alt) <= _VMEM_BUDGET
                and (tile_h_cap is None or alt <= tile_h_cap)):
            tile_h = alt
            num_h_tiles = _cdiv(H, alt)

    nchunk = 2 if (num_h_tiles >= 2 and num_h_tiles % 2 == 0) else 1
    tiles_per_chunk = num_h_tiles // nchunk

    has_tail = num_h_tiles * tile_h != H
    fold = (tile_h % _SUBLANE == 0) and tile_h > _SUBLANE
    acc_r = _SUBLANE if fold else tile_h

    kernel = functools.partial(
        _spatial_reg_loss_kernel,
        norm=norm, min_visibility=min_visibility, ignore_index=ignore_index,
        num_channels=C, h_total=H, tile_h=tile_h,
        tiles_per_chunk=tiles_per_chunk, has_tail=has_tail, fold=fold)

    def pt_map(b, c, t):
        return (b, 0, c * tiles_per_chunk + t, 0)

    inputs = [pred, target]
    in_specs = [
        pl.BlockSpec((1, C, tile_h, W), pt_map),
        pl.BlockSpec((1, C, tile_h, W), pt_map),
    ]
    if use_vis:
        inputs.append(visibility)
        in_specs.append(
            pl.BlockSpec((1, tile_h, W),
                         lambda b, c, t: (b, c * tiles_per_chunk + t, 0)))

    out_shapes = [jax.ShapeDtypeStruct((B, nchunk, acc_r, W), jnp.float32)]
    out_specs = [pl.BlockSpec((1, 1, acc_r, W), lambda b, c, t: (b, c, 0, 0))]
    if need_mask:
        out_shapes.append(
            jax.ShapeDtypeStruct((B, nchunk, acc_r, W), jnp.float32))
        out_specs.append(
            pl.BlockSpec((1, 1, acc_r, W), lambda b, c, t: (b, c, 0, 0)))

    vmem_limit = max(32 * 1024 * 1024, int(live_bytes(tile_h) * 1.25))

    outs = pl.pallas_call(
        kernel,
        out_shape=tuple(out_shapes),
        grid_spec=pltpu.PrefetchScalarGridSpec(
            num_scalar_prefetch=0,
            grid=(B, nchunk, tiles_per_chunk),
            in_specs=in_specs,
            out_specs=out_specs,
        ),
        compiler_params=pltpu.CompilerParams(
            dimension_semantics=("parallel", "parallel", "arbitrary"),
            vmem_limit_bytes=vmem_limit),
    )(*inputs)

    loss_sum = jnp.sum(outs[0])
    if need_mask:
        mask_sum = jnp.sum(outs[1])
    else:
        mask_sum = jnp.float32(B * C * H * W)
    return loss_sum / (mask_sum + jnp.float32(eps))


def _reference(pred, target, visibility, norm, min_visibility, ignore_index,
               eps=1e-6):
    pred = pred.astype(jnp.float32)
    target = target.astype(jnp.float32)
    mask = jnp.ones_like(target, dtype=jnp.bool_)
    if min_visibility > 0:
        mask = mask & (visibility >= min_visibility)[:, None]
    if ignore_index is not None:
        mask = mask & (target != ignore_index)
    loss = jnp.abs(pred - target) if norm == 1 else (pred - target) ** 2
    return (loss * mask).sum() / (mask.sum() + eps)


if __name__ == "__main__":
    key = jax.random.PRNGKey(0)

    # --- config 1: norm=1, visibility + ignore_index masks, single tile ----
    NORM, MIN_VIS, IGN = 1, 2, 255.0
    B, C, H, W = 2, 4, 16, 16
    k_pred, k_tgt, k_vis, k_ign, key = jax.random.split(key, 5)
    pred = jax.random.normal(k_pred, (B, C, H, W), dtype=jnp.float32)
    target = jax.random.normal(k_tgt, (B, C, H, W), dtype=jnp.float32)
    ign_mask = jax.random.uniform(k_ign, (B, C, H, W)) < 0.1
    target = jnp.where(ign_mask, jnp.float32(IGN), target)
    visibility = jax.random.randint(k_vis, (B, H, W), 0, 4, dtype=jnp.int32)

    out1 = spatial_regression_loss(pred, target, visibility, norm=NORM,
                                   min_visibility=MIN_VIS, ignore_index=IGN)
    out1 = jax.block_until_ready(out1)
    ref1 = _reference(pred, target, visibility, NORM, MIN_VIS, IGN)
    assert jnp.allclose(out1, ref1, rtol=1e-5, atol=1e-5), (out1, ref1)

    # --- config 2: norm=2, no mask, 10x10 (tile_h == H, not multiple of 8) --
    B2, C2, H2, W2 = 2, 3, 10, 10
    k_pred2, k_tgt2, key = jax.random.split(key, 3)
    pred2 = jax.random.normal(k_pred2, (B2, C2, H2, W2), dtype=jnp.float32)
    target2 = jax.random.normal(k_tgt2, (B2, C2, H2, W2), dtype=jnp.float32)
    vis2 = jnp.zeros((B2, H2, W2), dtype=jnp.int32)   # unused (min_vis == 0)

    out2 = spatial_regression_loss(pred2, target2, vis2, norm=2,
                                   min_visibility=0, ignore_index=None)
    out2 = jax.block_until_ready(out2)
    ref2 = _reference(pred2, target2, vis2, 2, 0, None)
    assert jnp.allclose(out2, ref2, rtol=1e-5, atol=1e-5), (out2, ref2)

    # --- config 3: bf16 + int8 vis, multi-tile + partial tail + 2 chunks ----
    B3, C3, H3, W3 = 1, 2, 30, 16
    k_pred3, k_tgt3, k_vis3, key = jax.random.split(key, 4)
    pred3 = jax.random.normal(k_pred3, (B3, C3, H3, W3), dtype=jnp.bfloat16)
    target3 = jax.random.normal(k_tgt3, (B3, C3, H3, W3), dtype=jnp.bfloat16)
    vis3 = jax.random.randint(k_vis3, (B3, H3, W3), 0, 3,
                              dtype=jnp.int32).astype(jnp.int8)

    out3 = spatial_regression_loss(pred3, target3, vis3, norm=1,
                                   min_visibility=1, ignore_index=None,
                                   tile_h_cap=8)   # force multi-tile path
    out3 = jax.block_until_ready(out3)
    ref3 = _reference(pred3, target3, vis3, 1, 1, None)
    assert jnp.allclose(out3, ref3, rtol=1e-4, atol=1e-4), (out3, ref3)

    print("KERNEL_OK")
</pallas_src>

<mosaic_0001>
module attributes {stable_mosaic.version = 11 : i64} {
  func.func @_spatial_reg_loss_kernel(%arg0: i32, %arg1: i32, %arg2: i32, %arg3: memref<1x4x16x16xf32, #tpu.memory_space<vmem>>, %arg4: memref<1x4x16x16xf32, #tpu.memory_space<vmem>>, %arg5: memref<1x16x16xi32, #tpu.memory_space<vmem>>, %arg6: memref<1x1x8x16xf32, #tpu.memory_space<vmem>>, %arg7: memref<1x1x8x16xf32, #tpu.memory_space<vmem>>) attributes {dimension_semantics = [#tpu.dimension_semantics<parallel>, #tpu.dimension_semantics<parallel>, #tpu.dimension_semantics<arbitrary>], iteration_bounds = array<i64: 2, 1, 1>, scalar_prefetch = 0 : i64, scratch_operands = 0 : i64, tpu.core_type = #tpu.core_type<tc>, window_params = [{transform_indices = @transform_0, window_bounds = array<i64: 1, 4, 16, 16>}, {transform_indices = @transform_1, window_bounds = array<i64: 1, 4, 16, 16>}, {transform_indices = @transform_2, window_bounds = array<i64: 1, 16, 16>}, {transform_indices = @transform_3, window_bounds = array<i64: 1, 1, 8, 16>}, {transform_indices = @transform_4, window_bounds = array<i64: 1, 1, 8, 16>}]} {
    %c0 = arith.constant 0 : index
    %c0_0 = arith.constant 0 : index
    %c0_1 = arith.constant 0 : index
    %c0_2 = arith.constant 0 : index
    %0 = vector.load %arg3[%c0, %c0_0, %c0_1, %c0_2] : memref<1x4x16x16xf32, #tpu.memory_space<vmem>>, vector<1x4x16x16xf32>
    %1 = vector.shape_cast %0 : vector<1x4x16x16xf32> to vector<4x16x16xf32>
    %c0_3 = arith.constant 0 : index
    %c0_4 = arith.constant 0 : index
    %c0_5 = arith.constant 0 : index
    %c0_6 = arith.constant 0 : index
    %2 = vector.load %arg4[%c0_3, %c0_4, %c0_5, %c0_6] : memref<1x4x16x16xf32, #tpu.memory_space<vmem>>, vector<1x4x16x16xf32>
    %3 = vector.shape_cast %2 : vector<1x4x16x16xf32> to vector<4x16x16xf32>
    %4 = arith.subf %1, %3 : vector<4x16x16xf32>
    %5 = math.absf %4 : vector<4x16x16xf32>
    %c0_7 = arith.constant 0 : index
    %c0_8 = arith.constant 0 : index
    %c0_9 = arith.constant 0 : index
    %6 = vector.load %arg5[%c0_7, %c0_8, %c0_9] : memref<1x16x16xi32, #tpu.memory_space<vmem>>, vector<1x16x16xi32>
    %c2_i32 = arith.constant 2 : i32
    %7 = vector.broadcast %c2_i32 : i32 to vector<1x16x16xi32>
    %8 = arith.cmpi sge, %6, %7 : vector<1x16x16xi32>
    %cst = arith.constant 2.550000e+02 : f32
    %9 = vector.broadcast %cst : f32 to vector<4x16x16xf32>
    %10 = arith.cmpf one, %3, %9 : vector<4x16x16xf32>
    %11 = vector.broadcast %8 : vector<1x16x16xi1> to vector<4x16x16xi1>
    %12 = arith.andi %11, %10 : vector<4x16x16xi1>
    %cst_10 = arith.constant 0.000000e+00 : f32
    %13 = vector.broadcast %cst_10 : f32 to vector<4x16x16xf32>
    %14 = arith.select %12, %5, %13 : vector<4x16x16xi1>, vector<4x16x16xf32>
    %cst_11 = arith.constant dense<0.000000e+00> : vector<16x16xf32>
    %15 = vector.multi_reduction <add>, %14, %cst_11 [0] : vector<4x16x16xf32> to vector<16x16xf32>
    %16 = vector.shape_cast %15 : vector<16x16xf32> to vector<2x8x16xf32>
    %cst_12 = arith.constant dense<0.000000e+00> : vector<8x16xf32>
    %17 = vector.multi_reduction <add>, %16, %cst_12 [0] : vector<2x8x16xf32> to vector<8x16xf32>
    %18 = arith.extui %12 : vector<4x16x16xi1> to vector<4x16x16xi32>
    %19 = arith.sitofp %18 : vector<4x16x16xi32> to vector<4x16x16xf32>
    %cst_13 = arith.constant dense<0.000000e+00> : vector<16x16xf32>
    %20 = vector.multi_reduction <add>, %19, %cst_13 [0] : vector<4x16x16xf32> to vector<16x16xf32>
    %21 = vector.shape_cast %20 : vector<16x16xf32> to vector<2x8x16xf32>
    %cst_14 = arith.constant dense<0.000000e+00> : vector<8x16xf32>
    %22 = vector.multi_reduction <add>, %21, %cst_14 [0] : vector<2x8x16xf32> to vector<8x16xf32>
    %23 = vector.shape_cast %17 : vector<8x16xf32> to vector<1x1x8x16xf32>
    %24 = vector.shape_cast %22 : vector<8x16xf32> to vector<1x1x8x16xf32>
    %c0_i32 = arith.constant 0 : i32
    %25 = arith.cmpi eq, %arg2, %c0_i32 : i32
    %26 = arith.extui %25 : i1 to i32
    %c0_i32_15 = arith.constant 0 : i32
    %27 = arith.cmpi ne, %26, %c0_i32_15 : i32
    scf.if %27 {
      %c0_18 = arith.constant 0 : index
      %c0_19 = arith.constant 0 : index
      %c0_20 = arith.constant 0 : index
      %c0_21 = arith.constant 0 : index
      %31 = vector.load %arg6[%c0_18, %c0_19, %c0_20, %c0_21] : memref<1x1x8x16xf32, #tpu.memory_space<vmem>>, vector<1x1x8x16xf32>
      tpu.vector_store %arg6[%c0_18, %c0_19, %c0_20, %c0_21], %23 {strides = array<i32>} : memref<1x1x8x16xf32, #tpu.memory_space<vmem>>, vector<1x1x8x16xf32>,
      %c0_22 = arith.constant 0 : index
      %c0_23 = arith.constant 0 : index
      %c0_24 = arith.constant 0 : index
      %c0_25 = arith.constant 0 : index
      %32 = vector.load %arg7[%c0_22, %c0_23, %c0_24, %c0_25] : memref<1x1x8x16xf32, #tpu.memory_space<vmem>>, vector<1x1x8x16xf32>
      tpu.vector_store %arg7[%c0_22, %c0_23, %c0_24, %c0_25], %24 {strides = array<i32>} : memref<1x1x8x16xf32, #tpu.memory_space<vmem>>, vector<1x1x8x16xf32>,
    } else {
    }
    %c0_i32_16 = arith.constant 0 : i32
    %28 = arith.cmpi ne, %arg2, %c0_i32_16 : i32
    %29 = arith.extui %28 : i1 to i32
    %c0_i32_17 = arith.constant 0 : i32
    %30 = arith.cmpi ne, %29, %c0_i32_17 : i32
    scf.if %30 {
      %c0_18 = arith.constant 0 : index
      %c0_19 = arith.constant 0 : index
      %c0_20 = arith.constant 0 : index
      %c0_21 = arith.constant 0 : index
      %31 = vector.load %arg6[%c0_18, %c0_19, %c0_20, %c0_21] : memref<1x1x8x16xf32, #tpu.memory_space<vmem>>, vector<1x1x8x16xf32>
      %32 = arith.addf %31, %23 : vector<1x1x8x16xf32>
      %c0_22 = arith.constant 0 : index
      %c0_23 = arith.constant 0 : index
      %c0_24 = arith.constant 0 : index
      %c0_25 = arith.constant 0 : index
      %33 = vector.load %arg6[%c0_22, %c0_23, %c0_24, %c0_25] : memref<1x1x8x16xf32, #tpu.memory_space<vmem>>, vector<1x1x8x16xf32>
      tpu.vector_store %arg6[%c0_22, %c0_23, %c0_24, %c0_25], %32 {strides = array<i32>} : memref<1x1x8x16xf32, #tpu.memory_space<vmem>>, vector<1x1x8x16xf32>,
      %c0_26 = arith.constant 0 : index
      %c0_27 = arith.constant 0 : index
      %c0_28 = arith.constant 0 : index
      %c0_29 = arith.constant 0 : index
      %34 = vector.load %arg7[%c0_26, %c0_27, %c0_28, %c0_29] : memref<1x1x8x16xf32, #tpu.memory_space<vmem>>, vector<1x1x8x16xf32>
      %35 = arith.addf %34, %24 : vector<1x1x8x16xf32>
      %c0_30 = arith.constant 0 : index
      %c0_31 = arith.constant 0 : index
      %c0_32 = arith.constant 0 : index
      %c0_33 = arith.constant 0 : index
      %36 = vector.load %arg7[%c0_30, %c0_31, %c0_32, %c0_33] : memref<1x1x8x16xf32, #tpu.memory_space<vmem>>, vector<1x1x8x16xf32>
      tpu.vector_store %arg7[%c0_30, %c0_31, %c0_32, %c0_33], %35 {strides = array<i32>} : memref<1x1x8x16xf32, #tpu.memory_space<vmem>>, vector<1x1x8x16xf32>,
    } else {
    }
    return
  }
  func.func @transform_0(%arg0: i32, %arg1: i32, %arg2: i32) -> (i32, i32, i32, i32) {
    %c1_i32 = arith.constant 1 : i32
    %0 = arith.muli %arg1, %c1_i32 : i32
    %1 = arith.addi %0, %arg2 : i32
    %c0_i32 = arith.constant 0 : i32
    %c0_i32_0 = arith.constant 0 : i32
    %c0_i32_1 = arith.constant 0 : i32
    return %arg0, %c0_i32, %1, %c0_i32_0 : i32, i32, i32, i32
  }
  func.func @transform_1(%arg0: i32, %arg1: i32, %arg2: i32) -> (i32, i32, i32, i32) {
    %c1_i32 = arith.constant 1 : i32
    %0 = arith.muli %arg1, %c1_i32 : i32
    %1 = arith.addi %0, %arg2 : i32
    %c0_i32 = arith.constant 0 : i32
    %c0_i32_0 = arith.constant 0 : i32
    %c0_i32_1 = arith.constant 0 : i32
    return %arg0, %c0_i32, %1, %c0_i32_0 : i32, i32, i32, i32
  }
  func.func @transform_2(%arg0: i32, %arg1: i32, %arg2: i32) -> (i32, i32, i32) {
    %c1_i32 = arith.constant 1 : i32
    %0 = arith.muli %arg1, %c1_i32 : i32
    %1 = arith.addi %0, %arg2 : i32
    %c0_i32 = arith.constant 0 : i32
    %c0_i32_0 = arith.constant 0 : i32
    return %arg0, %1, %c0_i32 : i32, i32, i32
  }
  func.func @transform_3(%arg0: i32, %arg1: i32, %arg2: i32) -> (i32, i32, i32, i32) {
    %c0_i32 = arith.constant 0 : i32
    %c0_i32_0 = arith.constant 0 : i32
    %c0_i32_1 = arith.constant 0 : i32
    return %arg0, %arg1, %c0_i32, %c0_i32_0 : i32, i32, i32, i32
  }
  func.func @transform_4(%arg0: i32, %arg1: i32, %arg2: i32) -> (i32, i32, i32, i32) {
    %c0_i32 = arith.constant 0 : i32
    %c0_i32_0 = arith.constant 0 : i32
    %c0_i32_1 = arith.constant 0 : i32
    return %arg0, %arg1, %c0_i32, %c0_i32_0 : i32, i32, i32, i32
  }
}

</mosaic_0001>

<bundles_post_ra>
// kernel: tpu_custom_call.1
= control target key start
LH: loop header
LB: loop body
LE: loop exit
PB: predicated region body
PF: predicated region fallthrough
CT: control target
= control target key end

     0   :  { %s1272_s0 = inlined_call_operand.hbm [shape: f32[2,4,16,16], index: 0, kind: input, shape index: {}]   ;;  %s1273_s1 = inlined_call_operand.hbm [shape: f32[2,4,16,16], index: 1, kind: input, shape index: {}]   ;;  %s1274_s2 = inlined_call_operand.hbm [shape: s32[2,16,16], index: 2, kind: input, shape index: {}]   ;;  %s1275_s3 = inlined_call_operand.hbm [shape: f32[2,1,8,16], index: 3, kind: output, shape index: {0}]   ;;  %s1276_s4 = inlined_call_operand.hbm [shape: f32[2,1,8,16], index: 4, kind: output, shape index: {1}]  }
   0x1   :  { %1286 = sst [smem:[#allocation22_spill]] %s1273_s1 }
   0x2   :  { %1287 = sst [smem:[#allocation23_spill]] %s1276_s4 }
   0x3   :  { %10 = vsyncpa [#allocation3], 0 }
   0x4   :  { %12 = vsyncpa [#allocation3 + $0x1], 0 }
   0x5   :  { %13 = vsyncpa [#allocation6], 0 }
   0x6   :  { %15 = vsyncpa [#allocation6 + $0x1], 0 }
   0x7   :  { %16 = vsyncpa [#allocation4], 0 }
   0x8   :  { %18 = vsyncpa [#allocation4 + $0x1], 0 }
   0x9   :  { %19 = vsyncpa [#allocation10], 0 }
   0xa   :  { %21 = vsyncpa [#allocation10 + $0x1], 0  ;;  %s1053_s15 = smov 0   ;;  %s1055_s16 = smov 0  }
   0xb   :  { %s1057_s17 = smov 0   ;;  %s1059_s18 = smov 0  }
   0xc   :  { %s1061_s19 = smov 0   ;;  %s1063_s20 = smov 0  }
   0xd LB: > { %1288 = sst [smem:[#allocation15_spill]] %s1003_s15  ;;  %s1084_s21 = sadd.s32 4294967295, %s1023_s20   ;;  %s1023_s20 = sphi %s1063_s20, %s27_s20   ;;  %s1019_s19 = sphi %s1061_s19, %s1313_s19   ;;  %s1015_s18 = sphi %s1059_s18, %s1312_s18   ;;  %s1011_s17 = sphi %s1057_s17, %s1308_s17   ;;  %s1007_s16 = sphi %s1055_s16, %s1311_s16   ;;  %s1003_s15 = sphi %s1053_s15, %s1310_s15  }
   0xe   : > { %1289 = sst [smem:[#allocation16_spill]] %s1011_s17  ;;  %s700_s22 = sadd.s32 4294967294, %s1023_s20  }
   0xf   : > { %1290 = sst [smem:[#allocation17_spill]] %s1023_s20  ;;  %s46_s23 = sadd.s32 1, %s1019_s19 }
  0x10   : > { %s57_s24 = sadd.s32 1, %s1011_s17  ;;  %p48_p0 = scmp.ge.s32.totalorder %s46_s23, 2 }
  0x11   : > { %p64_p1 = scmp.ne.s32.totalorder %s1011_s17, %s1007_s16  ;;  %p65_p2 = scmp.eq.s32.totalorder %s1023_s20, 0 }
  0x12   : > { %p70_p3 = scmp.ne.s32.totalorder %s1007_s16, %s1003_s15  ;;  %s1315_s23 = smov (%p48_p0, %s46_s23), 0 }
  0x13   : > { %1291 = sst [smem:[#allocation18_spill]] %s1315_s23  ;;  %p1096_p4 = por %p65_p2, %p64_p1 }
  0x14   : > { %p71_p5 = scmp.eq.s32.totalorder %s1084_s21, 0  ;;  %s52_s26 = ssub.s32 %s1019_s19, %s1315_s23 }
  0x15   : > { %p156_p6 = scmp.eq.s32.totalorder %s1084_s21, 1  ;;  %p55_p7 = scmp.eq.s32.totalorder %s52_s26, 0 }
  0x16   : > { %p1104_p8 = por %p71_p5, %p70_p3  ;;  %p162_p10 = scmp.eq.s32.totalorder %s700_s22, 1 }
  0x17   : > { %p1108_p9 = por %p156_p6, %p64_p1  ;;  %p702_p12 = scmp.ge.s32.totalorder %s1023_s20, 2 }
  0x18   : > { %s1113_s29 = scalar_select %p55_p7, %s1011_s17, %s57_s24  }
  0x19   : > { %s1294_s28 = scalar_select %p1108_p9, 1, 0 }
  0x1a   : > { %1296 = sst [smem:[#allocation20_spill]] %s1113_s29  ;;  %p1115_p11 = por %p162_p10, %p70_p3 }
  0x1b   : > { %1295 = sst [smem:[#allocation19_spill]] %s1294_s28  ;;  %p762_p13 = scmp.lt.s32.totalorder %s1023_s20, 2 }
  0x1c   : > { %s1297_s30 = scalar_select %p1115_p11, 1, 0 }
  0x1d   : > { %s1122_s5 = sand.u32 1, %s1011_s17   ;;  %s732_s7 = sshll.u32 %s1019_s19, 6 }
  0x1e   : > { %1298 = sst [smem:[#allocation21_spill]] %s1297_s30  ;;  %s703_s6 = sshll.u32 %s1122_s5, 6 }
  0x1f   : > { %p1128_p0 = pnand %p762_p13, %p1096_p4  ;;  %s235_s9 = sand.u32 1, %s1023_s20  }
  0x20   : > { %s1300_s1 = sld [smem:[#allocation22_spill]]  ;;  %s239_s14 = scalar_lea.vmem [#allocation5], %s703_s6 }
  0x21   : > { %s250_s22 = sshll.u32 %s239_s14, 4  ;;  %s236_s24 = scalar_lea.sflag [#allocation6], %s235_s9  ;;  %s251_s22 = int_to_ptr.vmem [resolvable:$true] %s250_s22 }
  0x22   : > { %s1025_s25 = smov 128   ;;  %s1026_s26 = smov 8  }
  0x23   : > { %p712_p1 = scmp.ge.s32.totalorder %s1023_s20, 1  ;;  %p283_p2 = scmp.lt.s32.totalorder %s1023_s20, 3 }
  0x24   : > { %s211_s9 = scalar_lea.sflag [#allocation3], %s1122_s5 }
  0x25   : > { %p1140_p3 = pnand %p712_p1, %p283_p2 }
  0x26   : > { %s247_s12 = scalar_lea.hbm %s1300_s1, %s732_s7  ;;  %s214_s1 = scalar_lea.vmem [#allocation2], %s703_s6 }
  0x27   : > { %s248_s13 = sshll.u32 %s247_s12, 4  ;;  %s222_s12 = scalar_lea.hbm %s1272_s0, %s732_s7  ;;  %s249_s13 = int_to_ptr.hbm [resolvable:$true] %s248_s13 }
  0x28   : > { %751 = dma.hbm_to_vmem [thread:$0]  (!%p1128_p0), %s249_s13, 1024, %s251_s22, %s236_s24, %s1025_s25, %s1025_s25, %s1026_s26  }
  0x29   : > { %s223_s14 = sshll.u32 %s222_s12, 4  ;;  %s225_s29 = sshll.u32 %s214_s1, 4  ;;  %s224_s14 = int_to_ptr.hbm [resolvable:$true] %s223_s14  ;;  %s226_s29 = int_to_ptr.vmem [resolvable:$true] %s225_s29 }
  0x2a   : > { %748 = dma.hbm_to_vmem [thread:$0]  (!%p1128_p0), %s224_s14, 1024, %s226_s29, %s211_s9, %s1025_s25, %s1025_s25, %s1026_s26  }
  0x2b   : > { %s709_s13 = sshll.u32 %s1122_s5, 4  ;;  %s734_s22 = sshll.u32 %s1019_s19, 4 }
  0x2c   : > { %s272_s30 = scalar_lea.hbm %s1274_s2, %s734_s22  ;;  %s264_s28 = scalar_lea.vmem [#allocation7], %s709_s13 }
  0x2d   : > { %s273_s15 = sshll.u32 %s272_s30, 4  ;;  %s275_s4 = sshll.u32 %s264_s28, 4  ;;  %s274_s15 = int_to_ptr.hbm [resolvable:$true] %s273_s15  ;;  %s276_s4 = int_to_ptr.vmem [resolvable:$true] %s275_s4 }
  0x2e   : > { %754 = dma.hbm_to_vmem [thread:$0]  (!%p1128_p0), %s274_s15, 256, %s276_s4, %s236_s24, %s1025_s25, %s1025_s25, %s1026_s26  }
  0x2f   : > { %287 = sbr.rel (%p1140_p3) target bundleno = 95 (0x5f), region = 32  ;;  %s1160_s1 = sand.u32 (!%p1140_p3), 1, %s1007_s16  }
  0x30   : > { %s713_s29 = sshll.u32 (!%p1140_p3), %s1160_s1, 6  ;;  %s290_s5 = scalar_lea.sflag (!%p1140_p3), [#allocation3], %s1160_s1 }
  0x31   : > { %s293_s17 = scalar_lea.vmem (!%p1140_p3), [#allocation2], %s713_s29 }
  0x34   : > { %986 = dma.done.wait (%p1104_p8), %s290_s5, 1024  }
  0x35   : > { %988 = vsyncadd (%p1104_p8), %s290_s5, 4294966272  ;;  %s299_s4 = sand.u32 1, %s1084_s21   ;;  %s303_s20 = scalar_lea.vmem [#allocation5], %s713_s29 }
  0x36   : > { %s300_s15 = scalar_lea.sflag [#allocation6], %s299_s4 }
  0x37   : > { %990 = dma.done.wait (%p1104_p8), %s300_s15, 1280  }
  0x38   : > { %992 = vsyncadd (%p1104_p8), %s300_s15, 4294966016  ;;  %s715_s23 = sshll.u32 %s1160_s1, 4  ;;  %v360_v0 = vld [vmem:[%s293_s17] sm:$0xff]  ;;  %v361_v1 = vld [vmem:[%s293_s17 + $0x8] sm:$0xff]  ;;  %vm424_vm0 = vcmask 130048   ;;  %v1027_v35 = vmov 0.0  }
  0x39   : > { %v362_v2 = vld [vmem:[%s293_s17 + $0x10] sm:$0xff]  ;;  %v363_v3 = vld [vmem:[%s293_s17 + $0x18] sm:$0xff]  ;;  %v364_v4 = vld [vmem:[%s293_s17 + $0x20] sm:$0xff]  ;;  %s313_s21 = scalar_lea.vmem [#allocation7], %s715_s23  ;;  %s716_s27 = sshll.u32 %s1160_s1, 3 }
  0x3a   : > { %v365_v5 = vld [vmem:[%s293_s17 + $0x28] sm:$0xff]  ;;  %v366_v6 = vld [vmem:[%s293_s17 + $0x30] sm:$0xff]  ;;  %v367_v7 = vld [vmem:[%s293_s17 + $0x38] sm:$0xff]  ;;  %s728_s28 = sshll.u32 %s1015_s18, 3  ;;  %s346_s8 = scalar_lea.vmem [#allocation8], %s716_s27 }
  0x3b   : > { %v368_v8 = vld [vmem:[%s303_s20] sm:$0xff]  ;;  %v369_v9 = vld [vmem:[%s303_s20 + $0x8] sm:$0xff]  ;;  %v370_v10 = vld [vmem:[%s303_s20 + $0x10] sm:$0xff]  ;;  %s508_s7 = scalar_lea.hbm %s1275_s3, %s728_s28  ;;  %s510_s24 = sshll.u32 %s346_s8, 4  ;;  %s511_s24 = int_to_ptr.vmem [resolvable:$true] %s510_s24 }
  0x3c   : > { %v371_v11 = vld [vmem:[%s303_s20 + $0x18] sm:$0xff]  ;;  %v376_v12 = vsub.f32 %v360_v0, %v368_v8  ;;  %v372_v13 = vld [vmem:[%s303_s20 + $0x20] sm:$0xff]  ;;  %v373_v14 = vld [vmem:[%s303_s20 + $0x28] sm:$0xff]  ;;  %v377_v16 = vsub.f32 %v361_v1, %v369_v9  ;;  %v378_v17 = vsub.f32 %v362_v2, %v370_v10  ;;  %vm396_vm1 = vcmp.ne.f32.partialorder %v368_v8, 255.0  ;;  %s512_s25 = sshll.u32 %s508_s7, 4  ;;  %s1302_s11 = sld [smem:[#allocation23_spill]]  ;;  %s513_s25 = int_to_ptr.hbm [resolvable:$true] %s512_s25 }
  0x3d   : > { %v374_v15 = vld [vmem:[%s303_s20 + $0x30] sm:$0xff]  ;;  %v379_v18 = vsub.f32 %v363_v3, %v371_v11  ;;  %v375_v19 = vld [vmem:[%s303_s20 + $0x38] sm:$0xff]  ;;  %v380_v20 = vsub.f32 %v364_v4, %v372_v13  ;;  %v381_v21 = vsub.f32 %v365_v5, %v373_v14  ;;  %vm397_vm2 = vcmp.ne.f32.partialorder %v369_v9, 255.0  ;;  %s353_s9 = scalar_lea.vmem [#allocation9], %s716_s27  ;;  %s492_s29 = scalar_lea.sflag [#allocation4], %s1160_s1 }
  0x3e   : > { %v382_v22 = vsub.f32 %v366_v6, %v374_v15  ;;  %v392_v23 = vld [vmem:[%s313_s21] sm:$0xff]  ;;  %v393_v24 = vld [vmem:[%s313_s21 + $0x8] sm:$0xff]  ;;  %v383_v25 = vsub.f32 %v367_v7, %v375_v19  ;;  %v384_v26 = vand.u32 2147483647, %v376_v12  ;;  %v385_v27 = vand.u32 2147483647, %v377_v16 }
  0x3f   : > { %v386_v28 = vand.u32 2147483647, %v378_v17  ;;  %v387_v29 = vand.u32 2147483647, %v379_v18  ;;  %v388_v30 = vand.u32 2147483647, %v380_v20 }
  0x40   : > { %v389_v31 = vand.u32 2147483647, %v381_v21  ;;  %v390_v32 = vand.u32 2147483647, %v382_v22  ;;  %vm394_vm3 = vcmp.ge.s32.totalorder %v392_v23, 2  ;;  %vm395_vm4 = vcmp.ge.s32.totalorder %v393_v24, 2 }
  0x41   : > { %vm398_vm5 = vcmp.ne.f32.partialorder %v370_v10, 255.0  ;;  %v391_v33 = vand.u32 2147483647, %v383_v25  ;;  %vm399_vm6 = vcmp.ne.f32.partialorder %v371_v11, 255.0  ;;  %vm400_vm7 = vcmp.ne.f32.partialorder %v372_v13, 255.0  ;;  %vm408_vm9 = vmand %vm394_vm3, %vm396_vm1  ;;  %s525_s13 = sshll.u32 %s353_s9, 4  ;;  %s526_s13 = int_to_ptr.vmem [resolvable:$true] %s525_s13 }
  0x42   : > { %vm401_vm8 = vcmp.ne.f32.partialorder %v373_v14, 255.0  ;;  %vm402_vm10 = vcmp.ne.f32.partialorder %v374_v15, 255.0  ;;  %vm403_vm11 = vcmp.ne.f32.partialorder %v375_v19, 255.0  ;;  %vm409_vm12 = vmand %vm395_vm4, %vm397_vm2  ;;  %v416_v34 = vsel %vm408_vm9, %v384_v26, 0.0  ;;  %s523_s12 = scalar_lea.hbm %s1302_s11, %s728_s28  ;;  %s919_s18 = sshra.s32 %s513_s25, 4  ;;  %s920_s18 = int_to_ptr.hbm [resolvable:$true] %s919_s18 }
  0x43   : > { %v718_v36 = vsel %vm408_vm9, 1.0, %v1027_v35  ;;  %vm410_vm13 = vmand %vm394_vm3, %vm398_vm5  ;;  %v417_v37 = vsel %vm409_vm12, %v385_v27, 0.0  ;;  %v425_v38 = vsel %vm424_vm0, %v416_v34, 0.0  ;;  %v719_v39 = vsel %vm409_vm12, 1.0, %v1027_v35  ;;  %s527_s22 = sshll.u32 %s523_s12, 4  ;;  %s921_s5 = scalar_lea.hbm %s920_s18, 8  ;;  %s528_s22 = int_to_ptr.hbm [resolvable:$true] %s527_s22 }
  0x44   : > { %v458_v40 = vsel %vm424_vm0, %v718_v36, 0.0  ;;  %vm411_vm14 = vmand %vm395_vm4, %vm399_vm6  ;;  %v418_v41 = vsel %vm410_vm13, %v386_v28, 0.0  ;;  %v432_v42 = vsel %vm424_vm0, %v417_v37, 0.0  ;;  %v720_v43 = vsel %vm410_vm13, 1.0, %v1027_v35  ;;  %p922_p4 = scmp.ne.s32.totalorder %s920_s18, %s921_s5  ;;  %s925_s15 = scalar_lea.hbm %s1275_s3, 16 }
  0x45   : > { %v465_v44 = vsel %vm424_vm0, %v719_v39, 0.0  ;;  %vm412_vm15 = vmand %vm394_vm3, %vm400_vm7  ;;  %v419_v45 = vsel %vm411_vm14, %v387_v29, 0.0  ;;  %v426_v46 = vsel %vm424_vm0, %v418_v41, 0.0  ;;  %v721_v47 = vsel %vm411_vm14, 1.0, %v1027_v35  ;;  %p926_p7 = scmp.lt.s32.totalorder %s920_s18, %s1275_s3  ;;  %p927_p8 = scmp.lt.s32.totalorder %s925_s15, %s921_s5 }
  0x46   : > { %v459_v48 = vsel %vm424_vm0, %v720_v43, 0.0  ;;  %vm413_vm1 = vmand %vm395_vm4, %vm401_vm8  ;;  %v420_v49 = vsel %vm412_vm15, %v388_v30, 0.0  ;;  %v427_v50 = vadd.f32 %v426_v46, %v425_v38  ;;  %v433_v51 = vsel %vm424_vm0, %v419_v45, 0.0  ;;  %p923_p5 = pnand %p922_p4, %p1108_p9 }
  0x47   : > { %v722_v52 = vsel %vm412_vm15, 1.0, %v1027_v35  ;;  %vm414_vm2 = vmand %vm394_vm3, %vm402_vm10  ;;  %v421_v53 = vsel %vm413_vm1, %v389_v31, 0.0  ;;  %v428_v54 = vsel %vm424_vm0, %v420_v49, 0.0  ;;  %v434_v55 = vadd.f32 %v433_v51, %v432_v42  ;;  %p928_p10 = por %p927_p8, %p926_p7 }
  0x48   : > { %v723_v56 = vsel %vm413_vm1, 1.0, %v1027_v35  ;;  %vm415_vm5 = vmand %vm395_vm4, %vm403_vm11  ;;  %v422_v57 = vsel %vm414_vm2, %v390_v32, 0.0  ;;  %v429_v58 = vadd.f32 %v428_v54, %v427_v50  ;;  %v435_v59 = vsel %vm424_vm0, %v421_v53, 0.0  ;;  %p924_p6 = pneg %p923_p5 }
  0x49   : > { %v724_v60 = vsel %vm414_vm2, 1.0, %v1027_v35  ;;  %v423_v61 = vsel %vm415_vm5, %v391_v33, 0.0  ;;  %v430_v62 = vsel %vm424_vm0, %v422_v57, 0.0  ;;  %v436_v63 = vadd.f32 %v435_v59, %v434_v55 }
  0x4a   : > { %v725_v0 = vsel %vm415_vm5, 1.0, %v1027_v35  ;;  %v431_v1 = vadd.f32 %v430_v62, %v429_v58  ;;  %v437_v2 = vsel %vm424_vm0, %v423_v61, 0.0  ;;  %v460_v3 = vadd.f32 %v459_v48, %v458_v40  ;;  %p929_p13 = pnand %p928_p10, %p924_p6 }
  0x4b   : > { %v461_v4 = vsel %vm424_vm0, %v722_v52, 0.0  ;;  %v438_v5 = vadd.f32 %v437_v2, %v436_v63  ;;  %v463_v6 = vsel %vm424_vm0, %v724_v60, 0.0  ;;  %v466_v7 = vsel %vm424_vm0, %v721_v47, 0.0 }
  0x4c   : > { %v468_v8 = vsel %vm424_vm0, %v723_v56, 0.0  ;;  %v439_v9 = vsel %vm424_vm0, %v431_v1, 0.0  ;;  %v462_v10 = vadd.f32 %v461_v4, %v460_v3  ;;  %v467_v11 = vadd.f32 %v466_v7, %v465_v44 }
  0x4d   : > { %v440_v12 = vsel %vm424_vm0, %v438_v5, 0.0  ;;  %v470_v13 = vsel %vm424_vm0, %v725_v0, 0.0 }
  0x4e   : > { %v441_v14 = vadd.f32 %v440_v12, %v439_v9  ;;  %v464_v15 = vadd.f32 %v463_v6, %v462_v10  ;;  %v469_v16 = vadd.f32 %v468_v8, %v467_v11 }
  0x50   : > { %479 = vst.msk [vmem:[%s346_s8] sm:$0xff] %vm424_vm0, %v441_v14  ;;  %v471_v17 = vadd.f32 %v470_v13, %v469_v16  ;;  %v472_v18 = vsel %vm424_vm0, %v464_v15, 0.0 }
  0x51   : > { %932 = shalt.err (!%p929_p13)
}
  0x52   : > { %741 = dma.vmem_to_hbm [thread:$0]  (%p1108_p9), %s511_s24, 128, %s513_s25, %s492_s29   ;;  %v473_v19 = vsel %vm424_vm0, %v471_v17, 0.0 }
  0x53   : > { %v474_v20 = vadd.f32 %v473_v19, %v472_v18  ;;  %s497_s21 = scalar_lea.sflag [#allocation10], %s1160_s1  ;;  %s947_s27 = sshra.s32 %s528_s22, 4  ;;  %s948_s27 = int_to_ptr.hbm [resolvable:$true] %s947_s27 }
  0x54   : > { %s949_s28 = scalar_lea.hbm %s948_s27, 8  ;;  %s953_s7 = scalar_lea.hbm %s1302_s11, 16 }
  0x55   : > { %480 = vst.msk [vmem:[%s353_s9] sm:$0xff] %vm424_vm0, %v474_v20  ;;  %p950_p0 = scmp.ne.s32.totalorder %s948_s27, %s949_s28  ;;  %p954_p3 = scmp.lt.s32.totalorder %s948_s27, %s1302_s11 }
  0x56   : > { %p955_p4 = scmp.lt.s32.totalorder %s953_s7, %s949_s28 }
  0x57   : > { %p951_p1 = pnand %p950_p0, %p1108_p9 }
  0x58   : > { %p956_p5 = por %p955_p4, %p954_p3 }
  0x59   : > { %p952_p2 = pneg %p951_p1 }
  0x5b   : > { %p957_p6 = pnand %p956_p5, %p952_p2 }
  0x5d   : > { %960 = shalt.err (!%p957_p6)
}
  0x5e   : > { %742 = dma.vmem_to_hbm [thread:$0]  (%p1108_p9), %s526_s13, 128, %s528_s22, %s497_s21  }
  0x5f PF: > { %s1304_s1 = sld [smem:[#allocation15_spill]]  ;;  %p756_p7 = pnand %p702_p12, %p1115_p11 }
  0x60   : > { %s1306_s26 = sld [smem:[#allocation17_spill]] }
  0x61   : > { %p757_p8 = pneg %p756_p7 }
  0x65   : > { %s539_s10 = sand.u32 1, %s1304_s1  }
  0x66   : > { %s540_s12 = scalar_lea.sflag [#allocation4], %s539_s10 }
  0x67   : > { %994 = dma.done.wait (%p757_p8), %s540_s12, 128  }
  0x68   : > { %996 = vsyncadd (%p757_p8), %s540_s12, 4294967168  ;;  %s550_s9 = scalar_lea.sflag [#allocation10], %s539_s10 }
  0x69   : > { %998 = dma.done.wait (%p757_p8), %s550_s9, 128  }
  0x6a   : > { %1000 = vsyncadd (%p757_p8), %s550_s9, 4294967168  ;;  %s27_s20 = sadd.s32 1, %s1306_s26   ;;  %s1307_s14 = sld [smem:[#allocation16_spill]] }
  0x6b   : > { %p24_p10 = scmp.ge.s32.totalorder %s27_s20, 4   ;;  %s1308_s17 = sld [smem:[#allocation20_spill]] }
  0x6c   : > { %s1309_s13 = sld [smem:[#allocation18_spill]]  ;;  %s1310_s15 = smov %s1007_s16 }
  0x6d   : > { %s1312_s18 = smov %s1019_s19 }
  0x6e   :  { %26 = sbr.rel (!%p24_p10) target bundleno = 13 (0xd), region = 126 }
  0x70   : > { %s1311_s16 = smov %s1307_s14 }
  0x72   : > { %s1313_s19 = smov %s1309_s13 }
  0x73   :  { %556 = vsyncpa [#allocation3], 1 }
  0x74   :  { %558 = vsyncpa [#allocation3 + $0x1], 1 }
  0x75   :  { %559 = vsyncpa [#allocation6], 1 }
  0x76   :  { %561 = vsyncpa [#allocation6 + $0x1], 1 }
  0x77   :  { %562 = vsyncpa [#allocation4], 1 }
  0x78   :  { %564 = vsyncpa [#allocation4 + $0x1], 1 }
  0x79   :  { %565 = vsyncpa [#allocation10], 1 }
  0x7a   :  { %567 = vsyncpa [#allocation10 + $0x1], 1 }

</bundles_post_ra>
